<compile_context>
chip_gen: v7x
topology: tpu7x:2x2x1
jax: 0.10.0
libtpu: 0.0.40
codegen_flags: <defaults>
</compile_context>

<pallas_src>
import functools
import math

import jax
import jax.numpy as jnp
from jax.experimental import pallas as pl
from jax.experimental.pallas import tpu as pltpu


_TARGET_BLOCK_BYTES = 2 * 1024 * 1024   # padded bytes per input block (target)
_MAX_BLOCK_BYTES = 4 * 1024 * 1024      # above this -> XLA fallback
_MIN_GRID_STEPS = 8                     # >=2 pipelined steps per TC on v7x
_MIN_SHRINK_BLOCK_BYTES = 512 * 1024    # don't shrink blocks below this


def _cdiv(a, b):
    return -(-a // b)


def _round_up(v, m):
    return _cdiv(v, m) * m


def _sublane(itemsize):
    # Sublane packing granularity: 8 rows for 32-bit, 16 for bf16, 32 for int8.
    return max(8, 32 // itemsize)


# ----------------------------------------------------------------------------
# Kernels
# ----------------------------------------------------------------------------
def _norm_reduce_mid_kernel(x_ref, y_ref, o_ref, *, norm_type):
    """Block (outer_tile, R, inner_tile) -> (outer_tile, inner_tile).

    Reduces the middle (sublane) axis; per-block upcast to f32 keeps bf16
    traffic in HBM while accumulating in f32.
    """
    err = x_ref[...].astype(jnp.float32) - y_ref[...].astype(jnp.float32)
    ne = jnp.abs(err) if norm_type == "l1" else err * err
    red = jnp.sum(ne, axis=1)                       # dense 2-D, no keepdims
    if norm_type == "l2":
        red = jnp.sqrt(red)
    o_ref[...] = red.astype(o_ref.dtype)


def _norm_reduce_last_kernel(x_ref, y_ref, o_ref, *, norm_type):
    """Block (outer_tile, R) -> (outer_tile,): reduce over the lane axis."""
    err = x_ref[...].astype(jnp.float32) - y_ref[...].astype(jnp.float32)
    ne = jnp.abs(err) if norm_type == "l1" else err * err
    red = jnp.sum(ne, axis=-1)                      # (outer_tile,)
    if norm_type == "l2":
        red = jnp.sqrt(red)
    o_ref[...] = red.astype(o_ref.dtype)


# ----------------------------------------------------------------------------
# Tile selection (padded-footprint aware)
# ----------------------------------------------------------------------------
def _choose_tiles_mid(outer, r, inner, itemsize):
    """Tiles for the (outer, R, inner) layout; None if no sane tiling exists."""
    r_pad = _round_up(r, _sublane(itemsize))        # sublane padding of R
    lane_budget = max(
        128, (_TARGET_BLOCK_BYTES // max(r_pad * itemsize, 1)) // 128 * 128)

    if inner % 128 == 0:
        inner_tile = min(inner, lane_budget)
    elif inner < 128 or r_pad * _round_up(inner, 128) * itemsize <= _TARGET_BLOCK_BYTES:
        inner_tile = inner                          # full dim: legal block extent
    else:
        # Large non-128-multiple inner: 128-multiple tile, masked tail block.
        inner_tile = min(max((inner // 128) * 128, 128), lane_budget)

    def per_row(it):
        return r_pad * _round_up(it, 128) * itemsize

    if outer < 8:
        outer_tile = outer                          # full dim (output block legal)
    else:
        ot = max(1, _TARGET_BLOCK_BYTES // per_row(inner_tile))
        outer_tile = outer if ot >= outer else max(8, (ot // 8) * 8)

    # v7x megacore / pipelining: prefer >= _MIN_GRID_STEPS grid steps while
    # blocks stay reasonably large.
    for _ in range(8):
        if _cdiv(outer, outer_tile) * _cdiv(inner, inner_tile) >= _MIN_GRID_STEPS:
            break
        if outer_tile * per_row(inner_tile) <= _MIN_SHRINK_BLOCK_BYTES:
            break
        if outer_tile >= 16:
            outer_tile = max(8, ((outer_tile // 2) // 8) * 8)
        elif inner_tile > 128 and inner_tile % 128 == 0:
            inner_tile = max(128, ((inner_tile // 2) // 128) * 128)
        else:
            break

    block_bytes = outer_tile * per_row(inner_tile)
    if block_bytes > _MAX_BLOCK_BYTES:
        return None
    return outer_tile, inner_tile, block_bytes


def _choose_tiles_last(outer, r, itemsize):
    """Tiles for the (outer, R) lane-reduce layout; None if infeasible."""
    r_pad = _round_up(r, 128)                       # R is the lane dim
    per_row = r_pad * itemsize
    ot = max(1, _TARGET_BLOCK_BYTES // per_row)
    if ot >= outer or outer <= 128:
        outer_tile = outer                          # full dim (legal everywhere)
    else:
        # Multiple of 128: legal for both the input sublane dim (mult of 8)
        # and the 1-D output lane dim.
        outer_tile = max(128, (ot // 128) * 128)

    for _ in range(8):
        if _cdiv(outer, outer_tile) >= _MIN_GRID_STEPS:
            break
        if outer_tile * per_row <= _MIN_SHRINK_BLOCK_BYTES:
            break
        new = ((outer_tile // 2) // 128) * 128
        if 128 <= new < outer_tile:
            outer_tile = new
        else:
            break

    block_bytes = _round_up(outer_tile, _sublane(itemsize)) * per_row
    if block_bytes > _MAX_BLOCK_BYTES:
        return None
    return outer_tile, block_bytes


def _vmem_limit_bytes(in_block_bytes, out_block_bytes, itemsize):
    """Explicit scoped-VMEM budget for the real footprint.

    2 inputs x 2 buffers in native dtype, plus f32 upcast/err/ne temporaries
    (dominant for bf16 inputs), plus the f32 output double buffer and slack.
    Capped at 48 MiB, safe under v7x's 64 MiB physical VMEM per TC.
    """
    f32_block = in_block_bytes * max(1, 4 // itemsize)
    footprint = (
        2 * 2 * in_block_bytes          # 2 inputs x double buffer (native dtype)
        + 3 * f32_block                 # in-kernel f32 upcast + temporaries
        + 2 * out_block_bytes           # f32 output double buffer
        + (2 << 20)                     # compiler scratch slack
    )
    return int(min(max(footprint, 16 << 20), 48 << 20))


# ----------------------------------------------------------------------------
# Pallas dispatch
# ----------------------------------------------------------------------------
def _norm_loss_pallas(x, y, norm_type, dim):
    """sum over `dim` of |x-y| or (x-y)^2 (+ sqrt for 'l2'), f32 output.

    Returns None when the layout is better served by the fused-XLA fallback
    (degenerate reduce dim, empty tensors, or blocks that would not fit the
    VMEM budget).
    """
    shape = x.shape
    d = dim if dim >= 0 else dim + x.ndim
    if d < 0 or d >= x.ndim:
        return None
    outer = math.prod(shape[:d])
    r = shape[d]
    inner = math.prod(shape[d + 1:])
    out_shape_final = shape[:d] + shape[d + 1:]

    if r <= 1 or outer == 0 or inner == 0:
        # R==1 is purely elementwise: 1-sublane blocks would waste 8-16x VMEM
        # and VPU density; let fused XLA handle it.
        return None

    itemsize = max(x.dtype.itemsize, y.dtype.itemsize)
    n = x.size
    out_elems = outer * inner
    cost = pl.CostEstimate(
        flops=3 * n,                                        # sub + abs/sq + add
        transcendentals=out_elems if norm_type == "l2" else 0,
        bytes_accessed=int(x.nbytes + y.nbytes + out_elems * 4),
    )

    if inner == 1:
        # Reduce dim is (effectively) the last axis: lane-reduce layout so the
        # block's lane dim is R, never 1.
        tiles = _choose_tiles_last(outer, r, itemsize)
        if tiles is None:
            return None
        outer_tile, in_block_bytes = tiles
        x2 = x.reshape(outer, r)
        y2 = y.reshape(outer, r)
        out_block_bytes = _round_up(outer_tile, 128) * 4
        out = pl.pallas_call(
            functools.partial(_norm_reduce_last_kernel, norm_type=norm_type),
            out_shape=jax.ShapeDtypeStruct((outer,), jnp.float32),
            grid=(_cdiv(outer, outer_tile),),
            in_specs=[
                pl.BlockSpec((outer_tile, r), lambda i: (i, 0)),
                pl.BlockSpec((outer_tile, r), lambda i: (i, 0)),
            ],
            out_specs=pl.BlockSpec((outer_tile,), lambda i: (i,)),
            compiler_params=pltpu.CompilerParams(
                dimension_semantics=("parallel",),
                vmem_limit_bytes=_vmem_limit_bytes(
                    in_block_bytes, out_block_bytes, itemsize),
            ),
            cost_estimate=cost,
        )(x2, y2)
        return out.reshape(out_shape_final)

    tiles = _choose_tiles_mid(outer, r, inner, itemsize)
    if tiles is None:
        return None
    outer_tile, inner_tile, in_block_bytes = tiles
    x3 = x.reshape(outer, r, inner)        # pure reshapes: no HBM copy, no upcast
    y3 = y.reshape(outer, r, inner)
    out_block_bytes = _round_up(outer_tile, 8) * _round_up(inner_tile, 128) * 4
    grid = (_cdiv(outer, outer_tile), _cdiv(inner, inner_tile))

    out = pl.pallas_call(
        functools.partial(_norm_reduce_mid_kernel, norm_type=norm_type),
        out_shape=jax.ShapeDtypeStruct((outer, inner), jnp.float32),
        grid=grid,
        in_specs=[
            pl.BlockSpec((outer_tile, r, inner_tile), lambda i, j: (i, 0, j)),
            pl.BlockSpec((outer_tile, r, inner_tile), lambda i, j: (i, 0, j)),
        ],
        # Dense 2-D output block: full-vreg unmasked stores (no size-1 sublane).
        out_specs=pl.BlockSpec((outer_tile, inner_tile), lambda i, j: (i, j)),
        compiler_params=pltpu.CompilerParams(
            # No cross-step carried state -> both axes independent; v7x can
            # shard the grid across its two TensorCores.
            dimension_semantics=("parallel", "parallel"),
            vmem_limit_bytes=_vmem_limit_bytes(
                in_block_bytes, out_block_bytes, itemsize),
        ),
        cost_estimate=cost,
    )(x3, y3)
    return out.reshape(out_shape_final)


def _norm_loss_ref(x, y, norm_type, dim):
    """Pure-JAX reference (also the fallback for tiny / degenerate cases)."""
    err = x - y
    ne = jnp.abs(err) if norm_type == "l1" else err * err
    if dim is not None:
        ne = jnp.sum(ne, axis=dim)
    if norm_type == "l2":
        ne = jnp.sqrt(ne)
    return ne


class NormLoss:
    """JAX/Pallas port of gnn_ssl.metrics.NormLoss."""

    def __init__(self, norm_type="l1", dim=1, key=None, min_pallas_bytes=1 << 20):
        if norm_type not in ("l1", "l2", "squared"):
            raise ValueError("Supported norms are 'l1', 'l2', and 'squared'")
        self.norm_type = norm_type
        self.dim = dim
        self.key = key
        # Inputs smaller than this (combined bytes) use the fused-XLA fallback:
        # pallas_call launch + grid overhead dwarfs the work for tiny tensors.
        self.min_pallas_bytes = min_pallas_bytes

    def __call__(self, model_output, targets, mean_reduce=False):
        if self.key:
            model_output = model_output[self.key]
            targets = targets[self.key]
        x = jnp.asarray(model_output)
        y = jnp.asarray(targets)
        res_dtype = jnp.result_type(x.dtype, y.dtype)

        normed = None
        use_pallas = (
            self.dim is not None                 # dim=None is elementwise -> XLA
            and x.shape == y.shape
            and x.ndim >= 1
            and x.nbytes + y.nbytes >= self.min_pallas_bytes
        )
        if use_pallas:
            normed = _norm_loss_pallas(x, y, self.norm_type, self.dim)  # f32 or None
        if normed is None:
            normed = _norm_loss_ref(x, y, self.norm_type, self.dim)

        if mean_reduce:
            # Mean over the (R-times smaller) f32 kernel output; XLA fuses it.
            normed = jnp.mean(normed)
        # Single cast at the API boundary (keeps f32 accumulation numerics).
        return normed.astype(res_dtype)


if __name__ == "__main__":
    rng = jax.random.PRNGKey(0)
    kx, ky = jax.random.split(rng)
    B, C, H, W = 2, 4, 16, 16
    x = jax.random.normal(kx, (B, C, H, W), dtype=jnp.float32)
    t = jax.random.normal(ky, (B, C, H, W), dtype=jnp.float32)

    # 1) Mid-axis reduce (dim=1), all norms, with and without mean_reduce.
    for norm_type in ("l1", "l2", "squared"):
        loss_fn = NormLoss(norm_type=norm_type, dim=1, min_pallas_bytes=0)
        out = jax.block_until_ready(loss_fn(x, t, mean_reduce=False))
        ref = _norm_loss_ref(x, t, norm_type, 1)
        assert out.shape == (B, H, W), (norm_type, out.shape)
        assert jnp.allclose(out, ref, atol=1e-5, rtol=1e-5), norm_type
        m = jax.block_until_ready(loss_fn(x, t, mean_reduce=True))
        assert jnp.allclose(m, jnp.mean(ref), atol=1e-5, rtol=1e-5), norm_type

    # 2) Last-axis reduce (dim=-1): dedicated lane-reduce kernel path.
    loss_last = NormLoss(norm_type="l2", dim=-1, min_pallas_bytes=0)
    out = jax.block_until_ready(loss_last(x, t))
    ref = _norm_loss_ref(x, t, "l2", -1)
    assert out.shape == (B, C, H), out.shape
    assert jnp.allclose(out, ref, atol=1e-5, rtol=1e-5)

    # 3) dim=None (purely elementwise) -> fused-XLA fallback by design.
    loss_none = NormLoss(norm_type="l1", dim=None, min_pallas_bytes=0)
    out = jax.block_until_ready(loss_none(x, t))
    assert out.shape == x.shape
    assert jnp.allclose(out, jnp.abs(x - t), atol=1e-6)

    # 4) Dict-keyed inputs (self.key) path.
    keyed = NormLoss(norm_type="l1", dim=1, key="pred", min_pallas_bytes=0)
    out = jax.block_until_ready(keyed({"pred": x}, {"pred": t}))
    assert jnp.allclose(out, _norm_loss_ref(x, t, "l1", 1), atol=1e-5, rtol=1e-5)

    # 5) bf16 inputs: bf16 traffic in HBM, f32 accumulation in-kernel, single
    #    cast back to bf16 at the API boundary.
    xb, tb = x.astype(jnp.bfloat16), t.astype(jnp.bfloat16)
    loss_bf16 = NormLoss(norm_type="l1", dim=1, min_pallas_bytes=0)
    ob = jax.block_until_ready(loss_bf16(xb, tb))
    refb = _norm_loss_ref(xb.astype(jnp.float32), tb.astype(jnp.float32), "l1", 1)
    assert ob.dtype == jnp.bfloat16
    assert jnp.allclose(ob.astype(jnp.float32), refb, atol=5e-2, rtol=5e-2)

    # 6) Moderately sized tensor exercising a multi-step grid (pipelining).
    k2x, k2y = jax.random.split(jax.random.PRNGKey(1))
    xl = jax.random.normal(k2x, (4, 8, 64, 256), dtype=jnp.float32)
    tl = jax.random.normal(k2y, (4, 8, 64, 256), dtype=jnp.float32)
    loss_big = NormLoss(norm_type="l2", dim=1, min_pallas_bytes=0)
    ol = jax.block_until_ready(loss_big(xl, tl))
    refl = _norm_loss_ref(xl, tl, "l2", 1)
    assert ol.shape == (4, 64, 256)
    assert jnp.allclose(ol, refl, atol=1e-4, rtol=1e-4)

    print("KERNEL_OK")
</pallas_src>

<mosaic_0001>
module attributes {stable_mosaic.version = 11 : i64} {
  func.func @_norm_reduce_mid_kernel(%arg0: i32, %arg1: i32, %arg2: memref<2x4x256xf32, #tpu.memory_space<vmem>>, %arg3: memref<2x4x256xf32, #tpu.memory_space<vmem>>, %arg4: memref<2x256xf32, #tpu.memory_space<vmem>>) attributes {dimension_semantics = [#tpu.dimension_semantics<parallel>, #tpu.dimension_semantics<parallel>], iteration_bounds = array<i64: 1, 1>, scalar_prefetch = 0 : i64, scratch_operands = 0 : i64, tpu.core_type = #tpu.core_type<tc>, window_params = [{transform_indices = @transform_0, window_bounds = array<i64: 2, 4, 256>}, {transform_indices = @transform_1, window_bounds = array<i64: 2, 4, 256>}, {transform_indices = @transform_2, window_bounds = array<i64: 2, 256>}]} {
    %c0 = arith.constant 0 : index
    %c0_0 = arith.constant 0 : index
    %c0_1 = arith.constant 0 : index
    %0 = vector.load %arg2[%c0, %c0_0, %c0_1] : memref<2x4x256xf32, #tpu.memory_space<vmem>>, vector<2x4x256xf32>
    %c0_2 = arith.constant 0 : index
    %c0_3 = arith.constant 0 : index
    %c0_4 = arith.constant 0 : index
    %1 = vector.load %arg3[%c0_2, %c0_3, %c0_4] : memref<2x4x256xf32, #tpu.memory_space<vmem>>, vector<2x4x256xf32>
    %2 = arith.subf %0, %1 : vector<2x4x256xf32>
    %3 = math.absf %2 : vector<2x4x256xf32>
    %cst = arith.constant dense<0.000000e+00> : vector<2x256xf32>
    %4 = vector.multi_reduction <add>, %3, %cst [1] : vector<2x4x256xf32> to vector<2x256xf32>
    %c0_5 = arith.constant 0 : index
    %c0_6 = arith.constant 0 : index
    %5 = vector.load %arg4[%c0_5, %c0_6] : memref<2x256xf32, #tpu.memory_space<vmem>>, vector<2x256xf32>
    tpu.vector_store %arg4[%c0_5, %c0_6], %4 {strides = array<i32>} : memref<2x256xf32, #tpu.memory_space<vmem>>, vector<2x256xf32>,
    return
  }
  func.func @transform_0(%arg0: i32, %arg1: i32) -> (i32, i32, i32) {
    %c0_i32 = arith.constant 0 : i32
    %c0_i32_0 = arith.constant 0 : i32
    return %arg0, %c0_i32, %arg1 : i32, i32, i32
  }
  func.func @transform_1(%arg0: i32, %arg1: i32) -> (i32, i32, i32) {
    %c0_i32 = arith.constant 0 : i32
    %c0_i32_0 = arith.constant 0 : i32
    return %arg0, %c0_i32, %arg1 : i32, i32, i32
  }
  func.func @transform_2(%arg0: i32, %arg1: i32) -> (i32, i32) {
    %c0_i32 = arith.constant 0 : i32
    return %arg0, %arg1 : i32, i32
  }
}

</mosaic_0001>

<bundles_post_ra>
// kernel: tpu_custom_call.1
= control target key start
LH: loop header
LB: loop body
LE: loop exit
PB: predicated region body
PF: predicated region fallthrough
CT: control target
= control target key end

     0   :  { %7 = vsyncpa [#allocation3], 0  ;;  %s269_s0 = inlined_call_operand.hbm [shape: f32[2,4,256], index: 0, kind: input, shape index: {}]   ;;  %s270_s1 = inlined_call_operand.hbm [shape: f32[2,4,256], index: 1, kind: input, shape index: {}]   ;;  %s271_s2 = inlined_call_operand.hbm [shape: f32[2,256], index: 2, kind: output, shape index: {}]  }
   0x1   :  { %8 = vsyncpa [#allocation6], 0 }
   0x2   :  { %9 = vsyncpa [#allocation4], 0  ;;  %s212_s9 = smov [#allocation2]   ;;  %s140_s13 = scalar_lea.hbm %s269_s0, 256 }
   0x3   :  { %s15_s10 = sshll.u32 %s212_s9, 4  ;;  %p141_p0 = scmp.ne.s32.totalorder %s269_s0, %s140_s13  ;;  %s16_s10 = int_to_ptr.vmem [resolvable:$true] %s15_s10 }
   0x4   :  { %p144_p1 = scmp.lt.u32.totalorder %s140_s13, %s269_s0 }
   0x6   :  { %p146_p2 = pnand %p144_p1, %p141_p0 }
   0x8   :  { %149 = shalt.err (!%p146_p2)
}
   0x9   :  { %s150_s18 = scalar_lea.vmem %s16_s10, 256  ;;  %p155_p4 = scmp.lt.s32.totalorder %s16_s10, %s16_s10 }
   0xa   :  { %p151_p3 = scmp.ne.s32.totalorder %s16_s10, %s150_s18  ;;  %p156_p5 = scmp.lt.s32.totalorder %s150_s18, %s150_s18 }
   0xc   :  { %p157_p6 = por %p156_p5, %p155_p4 }
   0xe   :  { %p158_p7 = pnand %p157_p6, %p151_p3 }
  0x10   :  { %161 = shalt.err (!%p158_p7)
}
  0x11   :  { %s213_s19 = smov 128   ;;  %s214_s20 = smov 8  }
  0x12   :  { %21 = dma.hbm_to_vmem [thread:$0]  %s269_s0, 256, %s16_s10, [#allocation3], %s213_s19, %s213_s19, %s214_s20  }
  0x13   :  { %s215_s23 = smov [#allocation5]   ;;  %s162_s27 = scalar_lea.hbm %s270_s1, 256 }
  0x14   :  { %s27_s24 = sshll.u32 %s215_s23, 4  ;;  %p163_p8 = scmp.ne.s32.totalorder %s270_s1, %s162_s27  ;;  %s28_s24 = int_to_ptr.vmem [resolvable:$true] %s27_s24 }
  0x15   :  { %p166_p9 = scmp.lt.u32.totalorder %s162_s27, %s270_s1 }
  0x17   :  { %p168_p10 = pnand %p166_p9, %p163_p8 }
  0x19   :  { %171 = shalt.err (!%p168_p10)
}
  0x1a   :  { %s172_s4 = scalar_lea.vmem %s28_s24, 256  ;;  %p177_p12 = scmp.lt.s32.totalorder %s28_s24, %s28_s24 }
  0x1b   :  { %p173_p11 = scmp.ne.s32.totalorder %s28_s24, %s172_s4  ;;  %p178_p13 = scmp.lt.s32.totalorder %s172_s4, %s172_s4 }
  0x1d   :  { %p179_p0 = por %p178_p13, %p177_p12 }
  0x1f   :  { %p180_p1 = pnand %p179_p0, %p173_p11 }
  0x21   :  { %183 = shalt.err (!%p180_p1)
}
  0x22   :  { %33 = dma.hbm_to_vmem [thread:$0]  %s270_s1, 256, %s28_s24, [#allocation6], %s213_s19, %s213_s19, %s214_s20  }
  0x23   :  { %206 = dma.done.wait [#allocation3], 256  }
  0x24   :  { %207 = vsyncadd [#allocation3], 4294967040 }
  0x25   :  { %208 = dma.done.wait [#allocation6], 256  }
  0x26   :  { %209 = vsyncadd [#allocation6], 4294967040  ;;  %v40_v0 = vld [vmem:[#allocation2] sm:$0xff]  ;;  %v41_v1 = vld [vmem:[#allocation2 + $0x8] sm:$0xff]  ;;  %vm54_vm0 = vcmask 1043456   ;;  %v91_v26 = vlaneseq  ;;  %vm108_vm1 = vcmask 1041409  }
  0x27   :  { %v42_v2 = vld [vmem:[#allocation5] sm:$0xff]  ;;  %v43_v3 = vld [vmem:[#allocation5 + $0x8] sm:$0xff]  ;;  %v216_v24 = vmov 1983009808   ;;  %vm110_vm2 = vcmask 1043459   ;;  %vm112_vm3 = vcmask 1045509  }
  0x28   :  { %v44_v4 = vsub.f32 %v40_v0, %v42_v2  ;;  %v45_v5 = vsub.f32 %v41_v1, %v43_v3  ;;  %v89_v25 = vunpack.c.l.s4 %v216_v24  ;;  %v92_v36 = vshrl.u32 %v91_v26, 7  ;;  %s217_s1 = smov [#allocation7]  }
  0x29   :  { %s124_s6 = sshll.u32 %s217_s1, 4  ;;  %vm114_vm4 = vcmask 1047559   ;;  %s125_s6 = int_to_ptr.vmem [resolvable:$true] %s124_s6 }
  0x2a   :  { %v46_v6 = vand.u32 2147483647, %v44_v4  ;;  %v47_v7 = vand.u32 2147483647, %v45_v5  ;;  %v90_v35 = vunpack.c.0.s8 %v89_v25  ;;  %s184_s7 = scalar_lea.vmem %s125_s6, 64  ;;  %p189_p3 = scmp.lt.s32.totalorder %s125_s6, %s125_s6 }
  0x2b   :  { %p185_p2 = scmp.ne.s32.totalorder %s125_s6, %s184_s7  ;;  %p190_p4 = scmp.lt.s32.totalorder %s184_s7, %s184_s7 }
  0x2c   :  { %v50_v8 = vcombine.high %v46_v6, %v46_v6  ;;  %v55_v9 = vsel %vm54_vm0, %v46_v6, 0.0  ;;  %v51_v10 = vcombine.high %v47_v7, %v47_v7  ;;  %v69_v12 = vsel %vm54_vm0, %v47_v7, 0.0 }
  0x2d   :  { %v56_v11 = vrot.slane %v55_v9, 4  ;;  %v70_v14 = vrot.slane %v69_v12, 4  ;;  %v93_v43 = vsub.s32 %v90_v35, %v92_v36  ;;  %p191_p5 = por %p190_p4, %p189_p3 }
  0x2e   :  { %v62_v13 = vsel %vm54_vm0, %v50_v8, 0.0  ;;  %v76_v17 = vsel %vm54_vm0, %v51_v10, 0.0 }
  0x2f   :  { %v57_v15 = vadd.f32 %v56_v11, %v55_v9  ;;  %v63_v16 = vrot.slane %v62_v13, 4  ;;  %v71_v18 = vadd.f32 %v70_v14, %v69_v12  ;;  %v77_v19 = vrot.slane %v76_v17, 4  ;;  %p192_p6 = pnand %p191_p5, %p185_p2 }
  0x31   :  { %v58_v20 = vrot.slane %v57_v15, 2  ;;  %v64_v21 = vadd.f32 %v63_v16, %v62_v13  ;;  %v72_v22 = vrot.slane %v71_v18, 2  ;;  %v78_v23 = vadd.f32 %v77_v19, %v76_v17 }
  0x33   :  { %v59_v27 = vadd.f32 %v58_v20, %v57_v15  ;;  %v65_v28 = vrot.slane %v64_v21, 2  ;;  %v73_v29 = vadd.f32 %v72_v22, %v71_v18  ;;  %v79_v30 = vrot.slane %v78_v23, 2 }
  0x35   :  { %v60_v31 = vrot.slane %v59_v27, 1  ;;  %v66_v32 = vadd.f32 %v65_v28, %v64_v21  ;;  %v74_v33 = vrot.slane %v73_v29, 1  ;;  %v80_v34 = vadd.f32 %v79_v30, %v78_v23 }
  0x37   :  { %v61_v37 = vadd.f32 %v60_v31, %v59_v27  ;;  %v67_v38 = vrot.slane %v66_v32, 1  ;;  %v75_v39 = vadd.f32 %v74_v33, %v73_v29  ;;  %v81_v40 = vrot.slane %v80_v34, 1 }
  0x39   :  { %v68_v41 = vadd.f32 %v67_v38, %v66_v32  ;;  %v82_v42 = vadd.f32 %v81_v40, %v80_v34 }
  0x3b   :  { %v87_v44 = vcombine.low %v61_v37, %v68_v41  ;;  %v95_v45 = vcombine.low %v75_v39, %v82_v42 }
  0x3d   :  { %v94_v46 = vrot.slane %v87_v44, %v93_v43  ;;  %v102_v47 = vrot.slane %v95_v45, %v93_v43 }
  0x3f   :  { %v107_v48 = vrot.slane %v102_v47, 7 }
  0x41   :  { %v109_v49 = vsel %vm108_vm1, %v107_v48, %v94_v46 }
  0x42   :  { %v111_v50 = vsel %vm110_vm2, %v107_v48, %v109_v49 }
  0x43   :  { %v113_v51 = vsel %vm112_vm3, %v107_v48, %v111_v50 }
  0x44   :  { %v115_v52 = vsel %vm114_vm4, %v107_v48, %v113_v51 }
  0x45   :  { %117 = vst [vmem:[#allocation7] sm:$0xf] %v115_v52 }
  0x46   :  { %195 = shalt.err (!%p192_p6)
}
  0x47   :  { %s196_s10 = scalar_lea.hbm %s271_s2, 64 }
  0x48   :  { %p197_p7 = scmp.ne.s32.totalorder %s271_s2, %s196_s10  ;;  %p200_p8 = scmp.lt.u32.totalorder %s196_s10, %s271_s2 }
  0x4a   :  { %p202_p9 = pnand %p200_p8, %p197_p7 }
  0x4c   :  { %205 = shalt.err (!%p202_p9)
}
  0x4d   :  { %127 = dma.vmem_to_hbm [thread:$0]  %s125_s6, 64, %s271_s2, [#allocation4]  }
  0x4e   :  { %210 = dma.done.wait [#allocation4], 64  }
  0x4f   :  { %211 = vsyncadd [#allocation4], 4294967232 }
  0x50   :  { %131 = vsyncpa [#allocation3], 1 }
  0x51   :  { %132 = vsyncpa [#allocation6], 1 }
  0x52   :  { %133 = vsyncpa [#allocation4], 1 }

</bundles_post_ra>
